<compile_context>
chip_gen: v6e
topology: v6e:2x2x1
jax: 0.10.0
libtpu: 0.0.40
codegen_flags: <defaults>
</compile_context>

<pallas_src>
import functools

import jax
import jax.numpy as jnp
from jax.experimental import pallas as pl
from jax.experimental.pallas import tpu as pltpu

POOL_SIZES = (5, 9, 13)   # ASPP.__init__ default; forward applies them reversed.


def _aspp_kernel(x_ref, o_ref, pad_ref, *, pool_sizes, h, w, p_max, p_top,
                 pad_value):
    """One (batch, channel-tile) block, NCHW layout.

    x_ref   : (1, tc, h, w)                      input block
    o_ref   : (1, nb, tc, h, w)                  nb = len(pool_sizes) + 1 branches
    pad_ref : (tc, p_top + h + p_max, w + 2*p_max)  VMEM padded-plane scratch
    """
    tc = x_ref.shape[1]
    P = p_max
    wp = w + 2 * P
    x = x_ref[0]                                            # (tc, h, w)

    # ---- border-only pad init (interior fully overwritten every step) ------
    full = functools.partial(jnp.full, fill_value=pad_value, dtype=pad_ref.dtype)
    pad_ref[:, p_top - P:p_top, :] = full((tc, P, wp))          # top rows
    pad_ref[:, p_top + h:p_top + h + P, :] = full((tc, P, wp))  # bottom rows
    pad_ref[:, p_top:p_top + h, 0:P] = full((tc, h, P))         # left cols
    pad_ref[:, p_top:p_top + h, P + w:] = full((tc, h, P))      # right cols
    pad_ref[:, p_top:p_top + h, P:P + w] = x                    # interior

    # ---- shared separable 5x5 base -----------------------------------------
    # m55[c, a, b] = max over padded rows (p_top-P)+a .. +a+4, cols b .. b+4.
    a0 = p_top - P
    nh5 = h + 2 * P - 4
    nw5 = w + 2 * P - 4
    m5r = pad_ref[:, a0:a0 + nh5, :]
    for d in range(1, 5):
        m5r = jnp.maximum(m5r, pad_ref[:, a0 + d:a0 + d + nh5, :])
    m55 = m5r[:, :, 0:nw5]
    for d in range(1, 5):
        m55 = jnp.maximum(m55, m5r[:, :, d:d + nw5])

    # ---- each branch = stride-4 2-D combine of m55 --------------------------
    # TODO(synk): strip-mining the combines over a few output rows would keep
    # them in vregs on v7x; skipped here since sharing m55 already removed the
    # per-branch intermediate slabs.
    def branch(k):
        p = k // 2
        off = P - p
        out = None
        for sr in range(0, k - 4, 4):
            rows = m55[:, off + sr:off + sr + h, :]
            for sc in range(0, k - 4, 4):
                v = rows[:, :, off + sc:off + sc + w]
                out = v if out is None else jnp.maximum(out, v)
        return out                                          # (tc, h, w)

    # Branch order matches torch.cat([mp13, mp9, mp5] + [x], dim=1):
    # pool_sizes arrives already reversed, identity goes last.
    for idx, k in enumerate(pool_sizes):
        o_ref[0, idx] = branch(k)
    o_ref[0, len(pool_sizes)] = x


def _vmem_limit_bytes():
    """Device-aware limit: ~75% of physical VMEM, capped at 100 MiB."""
    try:
        cap = int(pltpu.get_tpu_info().vmem_capacity_bytes)
    except Exception:                      # query unavailable -> v7x-safe default
        cap = 64 * 1024 * 1024
    return min(cap * 3 // 4, 100 * 1024 * 1024)


def _pick_channel_tile(n, c, h, w, nb, p_max, p_top, itemsize, budget_bytes):
    """Largest channel tile whose estimated VMEM footprint fits the budget.

    Footprint per grid step: double-buffered input + output blocks plus the
    padded scratch and ~3 compiler-materialized padded-size temporaries
    (m5r, m55, branch accumulator).
    """
    hp = p_top + h + p_max
    wp = w + 2 * p_max

    def fits(tc):
        elems = 2 * (1 + nb) * tc * h * w + 4 * tc * hp * wp
        return elems * itemsize <= budget_bytes

    divisors = [d for d in range(1, c + 1) if c % d == 0]
    fitting = [d for d in divisors if fits(d)] or [1]
    tc = fitting[-1]
    # With a single-image batch keep >= 2 grid steps so both v7x TCs get work.
    if n == 1 and tc == c and len(fitting) > 1:
        tc = fitting[-2]
    return tc


@functools.partial(jax.jit, static_argnames=("pool_sizes", "channel_tile"))
def aspp_forward(x, pool_sizes=POOL_SIZES, channel_tile=None):
    n, c, h, w = x.shape
    ks = tuple(int(k) for k in pool_sizes)[::-1]            # forward reverses
    for k in ks:
        # base-5 composition needs k in {5, 9, 13, ...}; module default is fine
        assert k % 2 == 1 and k >= 5 and (k - 5) % 4 == 0, ks
    p_max = max(ks) // 2
    p_top = max(p_max, 8)          # sublane-aligned interior row offset
    nb = len(ks) + 1

    if jnp.issubdtype(x.dtype, jnp.floating):
        pad_value = -float("inf")
    else:
        pad_value = int(jnp.iinfo(x.dtype).min)

    vmem_limit = _vmem_limit_bytes()
    if channel_tile is None:
        tc = _pick_channel_tile(n, c, h, w, nb, p_max, p_top,
                                jnp.dtype(x.dtype).itemsize,
                                budget_bytes=int(vmem_limit * 0.7))
    else:
        tc = int(channel_tile)
        assert c % tc == 0, (c, tc)

    kernel = functools.partial(_aspp_kernel, pool_sizes=ks, h=h, w=w,
                               p_max=p_max, p_top=p_top, pad_value=pad_value)
    out = pl.pallas_call(
        kernel,
        out_shape=jax.ShapeDtypeStruct((n, nb, c, h, w), x.dtype),
        grid=(n, c // tc),
        in_specs=[pl.BlockSpec((1, tc, h, w), lambda i, j: (i, j, 0, 0))],
        out_specs=pl.BlockSpec((1, nb, tc, h, w), lambda i, j: (i, 0, j, 0, 0)),
        scratch_shapes=[
            pltpu.VMEM((tc, p_top + h + p_max, w + 2 * p_max), x.dtype)],
        compiler_params=pltpu.CompilerParams(
            dimension_semantics=("parallel", "parallel"),
            vmem_limit_bytes=vmem_limit),
    )(x)

    # (n, nb, c, h, w) -> (n, nb*c, h, w): adjacent-dim merge, no data movement.
    return out.reshape(n, nb * c, h, w)


def _reference(x, pool_sizes=POOL_SIZES):
    """Plain-JAX reference (semantics of nn.MaxPool2d(k, 1, k // 2))."""
    feats = []
    for k in pool_sizes[::-1]:
        p = k // 2
        feats.append(jax.lax.reduce_window(
            x, -jnp.inf, jax.lax.max,
            window_dimensions=(1, 1, k, k),
            window_strides=(1, 1, 1, 1),
            padding=((0, 0), (0, 0), (p, p), (p, p))))
    feats.append(x)
    return jnp.concatenate(feats, axis=1)


if __name__ == "__main__":
    key = jax.random.PRNGKey(0)
    x = jax.random.normal(key, (2, 4, 16, 16), dtype=jnp.float32)

    out = jax.block_until_ready(aspp_forward(x))

    ref = _reference(x)
    assert out.shape == (2, 16, 16, 16), out.shape
    assert jnp.allclose(out, ref, atol=1e-6, rtol=1e-6), "mismatch vs reference"
    print("KERNEL_OK")
</pallas_src>

<mosaic_0001>
module attributes {stable_mosaic.version = 11 : i64} {
  func.func @_aspp_kernel(%arg0: i32, %arg1: i32, %arg2: memref<1x4x16x16xf32, #tpu.memory_space<vmem>>, %arg3: memref<1x4x4x16x16xf32, #tpu.memory_space<vmem>>, %arg4: memref<4x30x28xf32, #tpu.memory_space<vmem>>) attributes {dimension_semantics = [#tpu.dimension_semantics<parallel>, #tpu.dimension_semantics<parallel>], iteration_bounds = array<i64: 2, 1>, scalar_prefetch = 0 : i64, scratch_operands = 1 : i64, tpu.core_type = #tpu.core_type<tc>, window_params = [{transform_indices = @transform_0, window_bounds = array<i64: 1, 4, 16, 16>}, {transform_indices = @transform_1, window_bounds = array<i64: 1, 4, 4, 16, 16>}]} {
    %c0 = arith.constant 0 : index
    %c0_0 = arith.constant 0 : index
    %c0_1 = arith.constant 0 : index
    %c0_2 = arith.constant 0 : index
    %0 = vector.load %arg2[%c0, %c0_0, %c0_1, %c0_2] : memref<1x4x16x16xf32, #tpu.memory_space<vmem>>, vector<1x4x16x16xf32>
    %1 = vector.shape_cast %0 : vector<1x4x16x16xf32> to vector<4x16x16xf32>
    %cst = arith.constant 0xFF800000 : f32
    %2 = vector.broadcast %cst : f32 to vector<4x6x28xf32>
    %c0_3 = arith.constant 0 : index
    %c2 = arith.constant 2 : index
    %c0_4 = arith.constant 0 : index
    %3 = vector.load %arg4[%c0_3, %c2, %c0_4] : memref<4x30x28xf32, #tpu.memory_space<vmem>>, vector<4x6x28xf32>
    tpu.vector_store %arg4[%c0_3, %c2, %c0_4], %2 {strides = array<i32>} : memref<4x30x28xf32, #tpu.memory_space<vmem>>, vector<4x6x28xf32>,
    %cst_5 = arith.constant 0xFF800000 : f32
    %4 = vector.broadcast %cst_5 : f32 to vector<4x6x28xf32>
    %c0_6 = arith.constant 0 : index
    %c24 = arith.constant 24 : index
    %c0_7 = arith.constant 0 : index
    %5 = vector.load %arg4[%c0_6, %c24, %c0_7] : memref<4x30x28xf32, #tpu.memory_space<vmem>>, vector<4x6x28xf32>
    tpu.vector_store %arg4[%c0_6, %c24, %c0_7], %4 {strides = array<i32>} : memref<4x30x28xf32, #tpu.memory_space<vmem>>, vector<4x6x28xf32>,
    %cst_8 = arith.constant 0xFF800000 : f32
    %6 = vector.broadcast %cst_8 : f32 to vector<4x16x6xf32>
    %c0_9 = arith.constant 0 : index
    %c8 = arith.constant 8 : index
    %c0_10 = arith.constant 0 : index
    %7 = vector.load %arg4[%c0_9, %c8, %c0_10] : memref<4x30x28xf32, #tpu.memory_space<vmem>>, vector<4x16x6xf32>
    tpu.vector_store %arg4[%c0_9, %c8, %c0_10], %6 {strides = array<i32>} : memref<4x30x28xf32, #tpu.memory_space<vmem>>, vector<4x16x6xf32>,
    %cst_11 = arith.constant 0xFF800000 : f32
    %8 = vector.broadcast %cst_11 : f32 to vector<4x16x6xf32>
    %c0_12 = arith.constant 0 : index
    %c8_13 = arith.constant 8 : index
    %c22 = arith.constant 22 : index
    %9 = vector.load %arg4[%c0_12, %c8_13, %c22] : memref<4x30x28xf32, #tpu.memory_space<vmem>>, vector<4x16x6xf32>
    tpu.vector_store %arg4[%c0_12, %c8_13, %c22], %8 {strides = array<i32>} : memref<4x30x28xf32, #tpu.memory_space<vmem>>, vector<4x16x6xf32>,
    %c0_14 = arith.constant 0 : index
    %c8_15 = arith.constant 8 : index
    %c6 = arith.constant 6 : index
    %10 = vector.load %arg4[%c0_14, %c8_15, %c6] : memref<4x30x28xf32, #tpu.memory_space<vmem>>, vector<4x16x16xf32>
    tpu.vector_store %arg4[%c0_14, %c8_15, %c6], %1 {strides = array<i32>} : memref<4x30x28xf32, #tpu.memory_space<vmem>>, vector<4x16x16xf32>,
    %c0_16 = arith.constant 0 : index
    %c2_17 = arith.constant 2 : index
    %c0_18 = arith.constant 0 : index
    %11 = vector.load %arg4[%c0_16, %c2_17, %c0_18] : memref<4x30x28xf32, #tpu.memory_space<vmem>>, vector<4x24x28xf32>
    %c0_19 = arith.constant 0 : index
    %c3 = arith.constant 3 : index
    %c0_20 = arith.constant 0 : index
    %12 = vector.load %arg4[%c0_19, %c3, %c0_20] : memref<4x30x28xf32, #tpu.memory_space<vmem>>, vector<4x24x28xf32>
    %13 = arith.maximumf %11, %12 : vector<4x24x28xf32>
    %c0_21 = arith.constant 0 : index
    %c4 = arith.constant 4 : index
    %c0_22 = arith.constant 0 : index
    %14 = vector.load %arg4[%c0_21, %c4, %c0_22] : memref<4x30x28xf32, #tpu.memory_space<vmem>>, vector<4x24x28xf32>
    %15 = arith.maximumf %13, %14 : vector<4x24x28xf32>
    %c0_23 = arith.constant 0 : index
    %c5 = arith.constant 5 : index
    %c0_24 = arith.constant 0 : index
    %16 = vector.load %arg4[%c0_23, %c5, %c0_24] : memref<4x30x28xf32, #tpu.memory_space<vmem>>, vector<4x24x28xf32>
    %17 = arith.maximumf %15, %16 : vector<4x24x28xf32>
    %c0_25 = arith.constant 0 : index
    %c6_26 = arith.constant 6 : index
    %c0_27 = arith.constant 0 : index
    %18 = vector.load %arg4[%c0_25, %c6_26, %c0_27] : memref<4x30x28xf32, #tpu.memory_space<vmem>>, vector<4x24x28xf32>
    %19 = arith.maximumf %17, %18 : vector<4x24x28xf32>
    %20 = vector.extract_strided_slice %19 {offsets = [0, 0, 0], sizes = [4, 24, 24], strides = [1, 1, 1]} : vector<4x24x28xf32> to vector<4x24x24xf32>
    %21 = vector.extract_strided_slice %19 {offsets = [0, 0, 1], sizes = [4, 24, 24], strides = [1, 1, 1]} : vector<4x24x28xf32> to vector<4x24x24xf32>
    %22 = arith.maximumf %20, %21 : vector<4x24x24xf32>
    %23 = vector.extract_strided_slice %19 {offsets = [0, 0, 2], sizes = [4, 24, 24], strides = [1, 1, 1]} : vector<4x24x28xf32> to vector<4x24x24xf32>
    %24 = arith.maximumf %22, %23 : vector<4x24x24xf32>
    %25 = vector.extract_strided_slice %19 {offsets = [0, 0, 3], sizes = [4, 24, 24], strides = [1, 1, 1]} : vector<4x24x28xf32> to vector<4x24x24xf32>
    %26 = arith.maximumf %24, %25 : vector<4x24x24xf32>
    %27 = vector.extract_strided_slice %19 {offsets = [0, 0, 4], sizes = [4, 24, 24], strides = [1, 1, 1]} : vector<4x24x28xf32> to vector<4x24x24xf32>
    %28 = arith.maximumf %26, %27 : vector<4x24x24xf32>
    %29 = vector.extract_strided_slice %28 {offsets = [0, 0, 0], sizes = [4, 16, 24], strides = [1, 1, 1]} : vector<4x24x24xf32> to vector<4x16x24xf32>
    %30 = vector.extract_strided_slice %29 {offsets = [0, 0, 0], sizes = [4, 16, 16], strides = [1, 1, 1]} : vector<4x16x24xf32> to vector<4x16x16xf32>
    %31 = vector.extract_strided_slice %29 {offsets = [0, 0, 4], sizes = [4, 16, 16], strides = [1, 1, 1]} : vector<4x16x24xf32> to vector<4x16x16xf32>
    %32 = arith.maximumf %30, %31 : vector<4x16x16xf32>
    %33 = vector.extract_strided_slice %29 {offsets = [0, 0, 8], sizes = [4, 16, 16], strides = [1, 1, 1]} : vector<4x16x24xf32> to vector<4x16x16xf32>
    %34 = arith.maximumf %32, %33 : vector<4x16x16xf32>
    %35 = vector.extract_strided_slice %28 {offsets = [0, 4, 0], sizes = [4, 16, 24], strides = [1, 1, 1]} : vector<4x24x24xf32> to vector<4x16x24xf32>
    %36 = vector.extract_strided_slice %35 {offsets = [0, 0, 0], sizes = [4, 16, 16], strides = [1, 1, 1]} : vector<4x16x24xf32> to vector<4x16x16xf32>
    %37 = arith.maximumf %34, %36 : vector<4x16x16xf32>
    %38 = vector.extract_strided_slice %35 {offsets = [0, 0, 4], sizes = [4, 16, 16], strides = [1, 1, 1]} : vector<4x16x24xf32> to vector<4x16x16xf32>
    %39 = arith.maximumf %37, %38 : vector<4x16x16xf32>
    %40 = vector.extract_strided_slice %35 {offsets = [0, 0, 8], sizes = [4, 16, 16], strides = [1, 1, 1]} : vector<4x16x24xf32> to vector<4x16x16xf32>
    %41 = arith.maximumf %39, %40 : vector<4x16x16xf32>
    %42 = vector.extract_strided_slice %28 {offsets = [0, 8, 0], sizes = [4, 16, 24], strides = [1, 1, 1]} : vector<4x24x24xf32> to vector<4x16x24xf32>
    %43 = vector.extract_strided_slice %42 {offsets = [0, 0, 0], sizes = [4, 16, 16], strides = [1, 1, 1]} : vector<4x16x24xf32> to vector<4x16x16xf32>
    %44 = arith.maximumf %41, %43 : vector<4x16x16xf32>
    %45 = vector.extract_strided_slice %42 {offsets = [0, 0, 4], sizes = [4, 16, 16], strides = [1, 1, 1]} : vector<4x16x24xf32> to vector<4x16x16xf32>
    %46 = arith.maximumf %44, %45 : vector<4x16x16xf32>
    %47 = vector.extract_strided_slice %42 {offsets = [0, 0, 8], sizes = [4, 16, 16], strides = [1, 1, 1]} : vector<4x16x24xf32> to vector<4x16x16xf32>
    %48 = arith.maximumf %46, %47 : vector<4x16x16xf32>
    %c0_28 = arith.constant 0 : index
    %c0_29 = arith.constant 0 : index
    %c0_30 = arith.constant 0 : index
    %c0_31 = arith.constant 0 : index
    %c0_32 = arith.constant 0 : index
    %49 = vector.load %arg3[%c0_28, %c0_29, %c0_30, %c0_31, %c0_32] : memref<1x4x4x16x16xf32, #tpu.memory_space<vmem>>, vector<1x1x4x16x16xf32>
    %50 = vector.shape_cast %49 : vector<1x1x4x16x16xf32> to vector<4x16x16xf32>
    %51 = vector.shape_cast %48 : vector<4x16x16xf32> to vector<1x1x4x16x16xf32>
    tpu.vector_store %arg3[%c0_28, %c0_29, %c0_30, %c0_31, %c0_32], %51 {strides = array<i32>} : memref<1x4x4x16x16xf32, #tpu.memory_space<vmem>>, vector<1x1x4x16x16xf32>,
    %52 = vector.extract_strided_slice %28 {offsets = [0, 2, 0], sizes = [4, 16, 24], strides = [1, 1, 1]} : vector<4x24x24xf32> to vector<4x16x24xf32>
    %53 = vector.extract_strided_slice %52 {offsets = [0, 0, 2], sizes = [4, 16, 16], strides = [1, 1, 1]} : vector<4x16x24xf32> to vector<4x16x16xf32>
    %54 = vector.extract_strided_slice %52 {offsets = [0, 0, 6], sizes = [4, 16, 16], strides = [1, 1, 1]} : vector<4x16x24xf32> to vector<4x16x16xf32>
    %55 = arith.maximumf %53, %54 : vector<4x16x16xf32>
    %56 = vector.extract_strided_slice %28 {offsets = [0, 6, 0], sizes = [4, 16, 24], strides = [1, 1, 1]} : vector<4x24x24xf32> to vector<4x16x24xf32>
    %57 = vector.extract_strided_slice %56 {offsets = [0, 0, 2], sizes = [4, 16, 16], strides = [1, 1, 1]} : vector<4x16x24xf32> to vector<4x16x16xf32>
    %58 = arith.maximumf %55, %57 : vector<4x16x16xf32>
    %59 = vector.extract_strided_slice %56 {offsets = [0, 0, 6], sizes = [4, 16, 16], strides = [1, 1, 1]} : vector<4x16x24xf32> to vector<4x16x16xf32>
    %60 = arith.maximumf %58, %59 : vector<4x16x16xf32>
    %c0_33 = arith.constant 0 : index
    %c1 = arith.constant 1 : index
    %c0_34 = arith.constant 0 : index
    %c0_35 = arith.constant 0 : index
    %c0_36 = arith.constant 0 : index
    %61 = vector.load %arg3[%c0_33, %c1, %c0_34, %c0_35, %c0_36] : memref<1x4x4x16x16xf32, #tpu.memory_space<vmem>>, vector<1x1x4x16x16xf32>
    %62 = vector.shape_cast %61 : vector<1x1x4x16x16xf32> to vector<4x16x16xf32>
    %63 = vector.shape_cast %60 : vector<4x16x16xf32> to vector<1x1x4x16x16xf32>
    tpu.vector_store %arg3[%c0_33, %c1, %c0_34, %c0_35, %c0_36], %63 {strides = array<i32>} : memref<1x4x4x16x16xf32, #tpu.memory_space<vmem>>, vector<1x1x4x16x16xf32>,
    %64 = vector.extract_strided_slice %28 {offsets = [0, 4, 0], sizes = [4, 16, 24], strides = [1, 1, 1]} : vector<4x24x24xf32> to vector<4x16x24xf32>
    %65 = vector.extract_strided_slice %64 {offsets = [0, 0, 4], sizes = [4, 16, 16], strides = [1, 1, 1]} : vector<4x16x24xf32> to vector<4x16x16xf32>
    %c0_37 = arith.constant 0 : index
    %c2_38 = arith.constant 2 : index
    %c0_39 = arith.constant 0 : index
    %c0_40 = arith.constant 0 : index
    %c0_41 = arith.constant 0 : index
    %66 = vector.load %arg3[%c0_37, %c2_38, %c0_39, %c0_40, %c0_41] : memref<1x4x4x16x16xf32, #tpu.memory_space<vmem>>, vector<1x1x4x16x16xf32>
    %67 = vector.shape_cast %66 : vector<1x1x4x16x16xf32> to vector<4x16x16xf32>
    %68 = vector.shape_cast %65 : vector<4x16x16xf32> to vector<1x1x4x16x16xf32>
    tpu.vector_store %arg3[%c0_37, %c2_38, %c0_39, %c0_40, %c0_41], %68 {strides = array<i32>} : memref<1x4x4x16x16xf32, #tpu.memory_space<vmem>>, vector<1x1x4x16x16xf32>,
    %c0_42 = arith.constant 0 : index
    %c3_43 = arith.constant 3 : index
    %c0_44 = arith.constant 0 : index
    %c0_45 = arith.constant 0 : index
    %c0_46 = arith.constant 0 : index
    %69 = vector.load %arg3[%c0_42, %c3_43, %c0_44, %c0_45, %c0_46] : memref<1x4x4x16x16xf32, #tpu.memory_space<vmem>>, vector<1x1x4x16x16xf32>
    %70 = vector.shape_cast %69 : vector<1x1x4x16x16xf32> to vector<4x16x16xf32>
    %71 = vector.shape_cast %1 : vector<4x16x16xf32> to vector<1x1x4x16x16xf32>
    tpu.vector_store %arg3[%c0_42, %c3_43, %c0_44, %c0_45, %c0_46], %71 {strides = array<i32>} : memref<1x4x4x16x16xf32, #tpu.memory_space<vmem>>, vector<1x1x4x16x16xf32>,
    return
  }
  func.func @transform_0(%arg0: i32, %arg1: i32) -> (i32, i32, i32, i32) {
    %c0_i32 = arith.constant 0 : i32
    %c0_i32_0 = arith.constant 0 : i32
    %c0_i32_1 = arith.constant 0 : i32
    return %arg0, %arg1, %c0_i32, %c0_i32_0 : i32, i32, i32, i32
  }
  func.func @transform_1(%arg0: i32, %arg1: i32) -> (i32, i32, i32, i32, i32) {
    %c0_i32 = arith.constant 0 : i32
    %c0_i32_0 = arith.constant 0 : i32
    %c0_i32_1 = arith.constant 0 : i32
    %c0_i32_2 = arith.constant 0 : i32
    return %arg0, %c0_i32, %arg1, %c0_i32_0, %c0_i32_1 : i32, i32, i32, i32, i32
  }
}

</mosaic_0001>

<bundles_post_ra>
// kernel: aspp_forward.1
= control target key start
LH: loop header
LB: loop body
LE: loop exit
PB: predicated region body
PF: predicated region fallthrough
CT: control target
= control target key end

     0   :  { %6 = vsyncpa [#allocation4], 0  ;;  %s2020_s0 = inlined_call_operand.hbm [shape: f32[2,4,16,16], index: 0, kind: input, shape index: {}]   ;;  %s2021_s1 = inlined_call_operand.hbm [shape: f32[2,4,4,16,16], index: 1, kind: output, shape index: {}]  }
   0x1   :  { %8 = vsyncpa [#allocation4 + $0x1], 0 }
   0x2   :  { %9 = vsyncpa [#allocation5], 0 }
   0x3   :  { %11 = vsyncpa [#allocation5 + $0x1], 0  ;;  %s1268_s6 = smov 0   ;;  %s1270_s7 = smov 0  }
   0x4   :  { %s1272_s8 = smov 0   ;;  %s1274_s9 = smov 0  }
   0x5   :  { %s1276_s10 = smov 0   ;;  %s1278_s11 = smov 0  }
   0x6 LB: > { %s1013_s12 = sadd.s32 4294967295, %s1243_s11   ;;  %s1014_s13 = sadd.s32 4294967294, %s1243_s11   ;;  %s1243_s11 = sphi %s1278_s11, %s17_s11   ;;  %s1239_s10 = sphi %s1276_s10, %s2032_s10   ;;  %s1235_s9 = sphi %s1274_s9, %s2031_s9   ;;  %s1231_s8 = sphi %s1272_s8, %s2030_s8   ;;  %s1227_s7 = sphi %s1270_s7, %s2029_s7   ;;  %s1223_s6 = sphi %s1268_s6, %s2028_s6  }
   0x7   : > { %s29_s14 = sadd.s32 1, %s1239_s10  ;;  %s38_s15 = sadd.s32 1, %s1231_s8 }
   0x8   : > { %p31_p0 = scmp.ge.s32.totalorder %s29_s14, 2  ;;  %p45_p1 = scmp.ne.s32.totalorder %s1231_s8, %s1227_s7 }
   0x9   : > { %p46_p2 = scmp.eq.s32.totalorder %s1243_s11, 0  ;;  %p51_p3 = scmp.ne.s32.totalorder %s1227_s7, %s1223_s6 }
   0xa   : > { %s2034_s14 = smov (%p31_p0, %s29_s14), 0  ;;  %p52_p5 = scmp.eq.s32.totalorder %s1013_s12, 0 }
   0xb   : > { %p1309_p4 = por %p46_p2, %p45_p1  ;;  %s33_s17 = ssub.s32 %s1239_s10, %s2034_s14 }
   0xc   : > { %p77_p6 = scmp.eq.s32.totalorder %s1013_s12, 1  ;;  %p36_p7 = scmp.eq.s32.totalorder %s33_s17, 0 }
   0xd   : > { %p1315_p8 = por %p52_p5, %p51_p3  ;;  %p83_p10 = scmp.eq.s32.totalorder %s1014_s13, 1 }
   0xe   : > { %p1319_p9 = por %p77_p6, %p45_p1  ;;  %p1074_p13 = scmp.lt.s32.totalorder %s1243_s11, 2 }
   0xf   : > { %s1324_s20 = scalar_select %p36_p7, %s1231_s8, %s38_s15  }
  0x10   : > { %p1326_p11 = por %p83_p10, %p51_p3  ;;  %s103_s22 = sand.u32 1, %s1231_s8  }
  0x11   : > { %s1017_s23 = sshll.u32 %s103_s22, 6  ;;  %s1060_s24 = sshll.u32 %s1239_s10, 10 }
  0x12   : > { %s116_s27 = scalar_lea.hbm %s2020_s0, %s1060_s24  ;;  %s107_s28 = scalar_lea.vmem [#allocation3], %s1017_s23 }
  0x13   : > { %s117_s29 = sshll.u32 %s107_s28, 4  ;;  %p1339_p0 = pnand %p1074_p13, %p1309_p4  ;;  %s118_s29 = int_to_ptr.vmem [resolvable:$true] %s117_s29 }
  0x14   : > { %p1020_p1 = scmp.ge.s32.totalorder %s1243_s11, 1  ;;  %s104_s2 = scalar_lea.sflag [#allocation4], %s103_s22 }
  0x15   : > { %p1137_p2 = pneg %p1339_p0  ;;  %s1148_s3 = scalar_lea.vmem %s118_s29, 1024 }
  0x16   : > { %p1149_p3 = scmp.ne.s32.totalorder %s118_s29, %s1148_s3  ;;  %s1245_s4 = smov [#allocation3]  }
  0x17   : > { %s1153_s5 = sshll.u32 %s1245_s4, 4  ;;  %s1154_s5 = int_to_ptr.vmem [resolvable:$false] %s1153_s5 }
  0x18   : > { %p1151_p5 = pnand %p1149_p3, %p1137_p2  ;;  %s1155_s12 = scalar_lea.vmem %s1154_s5, 2048 }
  0x19   : > { %p1156_p7 = scmp.lt.s32.totalorder %s118_s29, %s1154_s5  ;;  %p1157_p10 = scmp.lt.s32.totalorder %s1155_s12, %s1148_s3 }
  0x1a   : > { %p1152_p6 = pneg %p1151_p5 }
  0x1b   : > { %p1158_p12 = por %p1157_p10, %p1156_p7 }
  0x1d   : > { %p1159_p4 = pnand %p1158_p12, %p1152_p6 }
  0x1f   : > { %1162 = shalt.err (!%p1159_p4)
}
  0x20   : > { %s1246_s13 = smov 128   ;;  %s1247_s15 = smov 8  }
  0x21   : > { %1069 = dma.hbm_to_vmem [thread:$0]  (!%p1339_p0), %s116_s27, 1024, %s118_s29, %s104_s2, %s1246_s13, %s1246_s13, %s1247_s15  }
  0x22   : > { %p125_p13 = scmp.lt.s32.totalorder %s1243_s11, 3 }
  0x24   : > { %p126_p2 = pnand %p1020_p1, %p125_p13 }
  0x25   : > { %s1352_s16 = sand.u32 (!%p126_p2), 1, %s1227_s7  }
  0x26   : > { %129 = sbr.rel (%p126_p2) target bundleno = 682 (0x2aa), region = 24  ;;  %s1021_s17 = sshll.u32 (!%p126_p2), %s1352_s16, 6 }
  0x27   : > { %s132_s22 = scalar_lea.sflag (!%p126_p2), [#allocation4], %s1352_s16  ;;  %s1356_s23 = scalar_lea.vmem (!%p126_p2), [#allocation3], %s1021_s17 }
  0x2b   : > { %1214 = dma.done.wait (%p1315_p8), %s132_s22, 1024  }
  0x2c   : > { %1216 = vsyncadd (%p1315_p8), %s132_s22, 4294966272  ;;  %vm173_vm0 = vcmask 48128   ;;  %v1248_v0 = vmov -inf   ;;  %vm182_vm1 = vcmask 228528   ;;  %vm164_vm2 = vcmask 226304   ;;  %s1022_s18 = sshll.u32 %s1352_s16, 8 }
  0x2d   : > { %176 = vst.msk [vmem:[#allocation2 + $0x28] sm:$0xff] %vm173_vm0, %v1248_v0  ;;  %174 = vst.msk [vmem:[#allocation2 + $0x8] sm:$0xff] %vm173_vm0, %v1248_v0  ;;  %v158_v1 = vld [vmem:[%s1356_s23 + $0x10] sm:$0xff]  ;;  %vm769_vm3 = vcmask 130048   ;;  %v156_v2 = vld [vmem:[%s1356_s23] sm:$0xff]  ;;  %s1249_s24 = smov 6  }
  0x2e   : > { %175 = vst.msk [vmem:[#allocation2 + $0x10] sm:$0xff] %vm173_vm0, %v1248_v0  ;;  %177 = vst.msk [vmem:[#allocation2 + $0x30] sm:$0xff] %vm173_vm0, %v1248_v0  ;;  %v159_v3 = vld [vmem:[%s1356_s23 + $0x18] sm:$0xff]  ;;  %203 = vrot.lane.b32.xlu1 %v158_v1, %s1249_s24  ;;  %s1382_s25 = scalar_lea.vmem [#allocation6], %s1022_s18  ;;  %199 = vrot.lane.b32.xlu0 %v156_v2, %s1249_s24  ;;  %v157_v4 = vld [vmem:[%s1356_s23 + $0x8] sm:$0xff]  ;;  %vm223_vm4 = vcmask 179248  }
  0x2f   : > { %178 = vst.msk [vmem:[#allocation2 + $0x48] sm:$0xff] %vm173_vm0, %v1248_v0  ;;  %179 = vst.msk [vmem:[#allocation2 + $0x50] sm:$0xff] %vm173_vm0, %v1248_v0  ;;  %v161_v5 = vld [vmem:[%s1356_s23 + $0x28] sm:$0xff]  ;;  %v160_v6 = vld [vmem:[%s1356_s23 + $0x20] sm:$0xff]  ;;  %s1250_s26 = smov 127   ;;  %s1251_s27 = smov 126  }
  0x30   : > { %180 = vst.msk [vmem:[#allocation2 + $0x68] sm:$0xff] %vm173_vm0, %v1248_v0  ;;  %181 = vst.msk [vmem:[#allocation2 + $0x70] sm:$0xff] %vm173_vm0, %v1248_v0  ;;  %v163_v7 = vld [vmem:[%s1356_s23 + $0x38] sm:$0xff]  ;;  %v162_v8 = vld [vmem:[%s1356_s23 + $0x30] sm:$0xff]  ;;  %s1252_s28 = smov 125   ;;  %s1253_s29 = smov 124  }
  0x31   : > { %185 = vst.msk [vmem:[#allocation2 + $0x28] sm:$0xff] %vm182_vm1, %v1248_v0  ;;  %183 = vst.msk [vmem:[#allocation2 + $0x8] sm:$0xff] %vm182_vm1, %v1248_v0  ;;  %s1254_s30 = smov 120   ;;  %vm620_vm5 = vcmask 1043456   ;;  %vm886_vm6 = vcmask 130052   ;;  %vm889_vm7 = vcmask 125952  }
  0x32   : > { %184 = vst.msk [vmem:[#allocation2 + $0x10] sm:$0xff] %vm182_vm1, %v1248_v0  ;;  %186 = vst.msk [vmem:[#allocation2 + $0x30] sm:$0xff] %vm182_vm1, %v1248_v0  ;;  %205 = vrot.lane.b32.xlu1 %v159_v3, %s1249_s24  ;;  %201 = vrot.lane.b32.xlu0 %v157_v4, %s1249_s24  ;;  %vm871_vm8 = vcmask 130050   ;;  %vm874_vm9 = vcmask 123904   ;;  %s1061_s2 = sshll.u32 %s1235_s9, 12  ;;  %s926_s3 = sshll.u32 %s1382_s25, 4  ;;  %s1968_s3 = int_to_ptr.vmem [resolvable:$true] %s926_s3 }
  0x33   : > { %187 = vst.msk [vmem:[#allocation2 + $0x48] sm:$0xff] %vm182_vm1, %v1248_v0  ;;  %188 = vst.msk [vmem:[#allocation2 + $0x50] sm:$0xff] %vm182_vm1, %v1248_v0  ;;  %s1966_s12 = scalar_lea.hbm %s2021_s1, %s1061_s2  ;;  %s910_s9 = scalar_lea.sflag [#allocation5], %s1352_s16 }
  0x34   : > { %189 = vst.msk [vmem:[#allocation2 + $0x68] sm:$0xff] %vm182_vm1, %v1248_v0  ;;  %190 = vst.msk [vmem:[#allocation2 + $0x70] sm:$0xff] %vm182_vm1, %v1248_v0  ;;  %s1163_s13 = scalar_lea.vmem %s1968_s3, 4096  ;;  %s1255_s15 = smov [#allocation6]  }
  0x35   : > { %165 = vst.msk [vmem:[#allocation2 + $0x2] sm:$0x3f] %vm164_vm2, %v1248_v0  ;;  %166 = vst.msk [vmem:[#allocation2 + $0x22] sm:$0x3f] %vm164_vm2, %v1248_v0  ;;  %p1164_p8 = scmp.ne.s32.totalorder %s1968_s3, %s1163_s13  ;;  %s1167_s17 = sshll.u32 %s1255_s15, 4  ;;  %s1168_s17 = int_to_ptr.vmem [resolvable:$false] %s1167_s17 }
  0x36   : > { %167 = vst.msk [vmem:[#allocation2 + $0x42] sm:$0x3f] %vm164_vm2, %v1248_v0  ;;  %168 = vst.msk [vmem:[#allocation2 + $0x62] sm:$0x3f] %vm164_vm2, %v1248_v0  ;;  %209 = vrot.lane.b32.xlu1 %v161_v5, %s1249_s24  ;;  %207 = vrot.lane.b32.xlu0 %v160_v6, %s1249_s24  ;;  %s1169_s22 = scalar_lea.vmem %s1168_s17, 8192  ;;  %p1170_p1 = scmp.lt.s32.totalorder %s1968_s3, %s1168_s17 }
  0x37   : > { %169 = vst.msk [vmem:[#allocation2 + $0x18] sm:$0x3f] %vm164_vm2, %v1248_v0  ;;  %170 = vst.msk [vmem:[#allocation2 + $0x38] sm:$0x3f] %vm164_vm2, %v1248_v0  ;;  %p1165_p12 = pnand %p1164_p8, %p1319_p9  ;;  %p1171_p3 = scmp.lt.s32.totalorder %s1169_s22, %s1163_s13 }
  0x38   : > { %171 = vst.msk [vmem:[#allocation2 + $0x58] sm:$0x3f] %vm164_vm2, %v1248_v0  ;;  %172 = vst.msk [vmem:[#allocation2 + $0x78] sm:$0x3f] %vm164_vm2, %v1248_v0 }
  0x39   : > { %1049 = vst.msk [vmem:[%s1382_s25 + $0xd0] sm:$0xff] %vm769_vm3, %v158_v1  ;;  %1047 = vst.msk [vmem:[%s1382_s25 + $0xc0] sm:$0xff] %vm769_vm3, %v156_v2  ;;  %p1166_p0 = pneg %p1165_p12  ;;  %p1172_p5 = por %p1171_p3, %p1170_p1 }
  0x3a   : > { %1050 = vst.msk [vmem:[%s1382_s25 + $0xd8] sm:$0xff] %vm769_vm3, %v159_v3  ;;  %1048 = vst.msk [vmem:[%s1382_s25 + $0xc8] sm:$0xff] %vm769_vm3, %v157_v4  ;;  %213 = vrot.lane.b32.xlu1 %v163_v7, %s1249_s24  ;;  %211 = vrot.lane.b32.xlu0 %v162_v8, %s1249_s24 }
  0x3b   : > { %1052 = vst.msk [vmem:[%s1382_s25 + $0xe8] sm:$0xff] %vm769_vm3, %v161_v5  ;;  %1051 = vst.msk [vmem:[%s1382_s25 + $0xe0] sm:$0xff] %vm769_vm3, %v160_v6  ;;  %p1173_p6 = pnand %p1172_p5, %p1166_p0 }
  0x3c   : > { %1054 = vst.msk [vmem:[%s1382_s25 + $0xf8] sm:$0xff] %vm769_vm3, %v163_v7  ;;  %1053 = vst.msk [vmem:[%s1382_s25 + $0xf0] sm:$0xff] %vm769_vm3, %v162_v8 }
  0xa0   : > { %v204_v9 = vpop.permute.xlu1 %203  ;;  %v200_v10 = vpop.permute.xlu0 %199 }
  0xa1   : > { %226 = vst.msk [vmem:[#allocation2 + $0x28] sm:$0xff] %vm223_vm4, %v204_v9  ;;  %224 = vst.msk [vmem:[#allocation2 + $0x8] sm:$0xff] %vm223_vm4, %v200_v10 }
  0xa4   : > { %v206_v11 = vpop.permute.xlu1 %205  ;;  %v202_v12 = vpop.permute.xlu0 %201 }
  0xa5   : > { %227 = vst.msk [vmem:[#allocation2 + $0x30] sm:$0xff] %vm223_vm4, %v206_v11  ;;  %225 = vst.msk [vmem:[#allocation2 + $0x10] sm:$0xff] %vm223_vm4, %v202_v12 }
  0xa8   : > { %v210_v13 = vpop.permute.xlu1 %209  ;;  %v208_v14 = vpop.permute.xlu0 %207  ;;  %v232_v15 = vld [vmem:[#allocation2 + $0x2] sm:$0xff] }
  0xa9   : > { %v244_v16 = vld [vmem:[#allocation2 + $0x3] sm:$0xff]  ;;  %229 = vst.msk [vmem:[#allocation2 + $0x50] sm:$0xff] %vm223_vm4, %v210_v13  ;;  %228 = vst.msk [vmem:[#allocation2 + $0x48] sm:$0xff] %vm223_vm4, %v208_v14 }
  0xaa   : > { %v256_v17 = vmax.f32 %v232_v15, %v244_v16  ;;  %v235_v18 = vld [vmem:[#allocation2 + $0x22] sm:$0xff] }
  0xab   : > { %v268_v19 = vld [vmem:[#allocation2 + $0x4] sm:$0xff] }
  0xac   : > { %v247_v20 = vld [vmem:[#allocation2 + $0x23] sm:$0xff]  ;;  %v280_v21 = vmax.f32 %v256_v17, %v268_v19  ;;  %v214_v22 = vpop.permute.xlu1 %213  ;;  %v212_v23 = vpop.permute.xlu0 %211  ;;  %v234_v25 = vld [vmem:[#allocation2 + $0x12] sm:$0xff] }
  0xad   : > { %v292_v24 = vld [vmem:[#allocation2 + $0x5] sm:$0xff]  ;;  %v246_v26 = vld [vmem:[#allocation2 + $0x13] sm:$0xff]  ;;  %v259_v27 = vmax.f32 %v235_v18, %v247_v20  ;;  %231 = vst.msk [vmem:[#allocation2 + $0x70] sm:$0xff] %vm223_vm4, %v214_v22  ;;  %230 = vst.msk [vmem:[#allocation2 + $0x68] sm:$0xff] %vm223_vm4, %v212_v23 }
  0xae   : > { %v304_v28 = vmax.f32 %v280_v21, %v292_v24  ;;  %v258_v29 = vmax.f32 %v234_v25, %v246_v26  ;;  %v233_v30 = vld [vmem:[#allocation2 + $0xa] sm:$0xff]  ;;  %v270_v33 = vld [vmem:[#allocation2 + $0x14] sm:$0xff] }
  0xaf   : > { %v271_v31 = vld [vmem:[#allocation2 + $0x24] sm:$0xff]  ;;  %v294_v37 = vld [vmem:[#allocation2 + $0x15] sm:$0xff]  ;;  %v269_v43 = vld [vmem:[#allocation2 + $0xc] sm:$0xff] }
  0xb0   : > { %v316_v32 = vld [vmem:[#allocation2 + $0x6] sm:$0xff]  ;;  %v282_v36 = vmax.f32 %v258_v29, %v270_v33  ;;  %v318_v42 = vld [vmem:[#allocation2 + $0x16] sm:$0xff]  ;;  %v283_v46 = vmax.f32 %v259_v27, %v271_v31  ;;  %v317_v52 = vld [vmem:[#allocation2 + $0xe] sm:$0xff] }
  0xb1   : > { %v245_v34 = vld [vmem:[#allocation2 + $0xb] sm:$0xff]  ;;  %v1413_v35 = vmax.f32 %v304_v28, %v316_v32  ;;  %v249_v51 = vld [vmem:[#allocation2 + $0x33] sm:$0xff]  ;;  %v238_v56 = vld [vmem:[#allocation2 + $0x42] sm:$0xff] }
  0xb2   : > { %v257_v38 = vmax.f32 %v233_v30, %v245_v34  ;;  %v236_v39 = vld [vmem:[#allocation2 + $0x2a] sm:$0xff]  ;;  %v306_v47 = vmax.f32 %v282_v36, %v294_v37  ;;  %v237_v50 = vld [vmem:[#allocation2 + $0x32] sm:$0xff] }
  0xb3   : > { %v248_v40 = vld [vmem:[#allocation2 + $0x2b] sm:$0xff]  ;;  %352 = vrot.lane.b32.xlu0 %v1413_v35, %s1250_s26  ;;  %v261_v54 = vmax.f32 %v237_v50, %v249_v51  ;;  %v273_v55 = vld [vmem:[#allocation2 + $0x34] sm:$0xff]  ;;  %v250_v60 = vld [vmem:[#allocation2 + $0x43] sm:$0xff] }
  0xb4   : > { %v295_v41 = vld [vmem:[#allocation2 + $0x25] sm:$0xff]  ;;  %v293_v44 = vld [vmem:[#allocation2 + $0xd] sm:$0xff]  ;;  %v260_v45 = vmax.f32 %v236_v39, %v248_v40  ;;  %v281_v48 = vmax.f32 %v257_v38, %v269_v43  ;;  %v1417_v57 = vmax.f32 %v306_v47, %v318_v42  ;;  %v262_v1 = vmax.f32 %v238_v56, %v250_v60  ;;  %v297_v6 = vld [vmem:[#allocation2 + $0x35] sm:$0xff] }
  0xb5   : > { %v272_v49 = vld [vmem:[#allocation2 + $0x2c] sm:$0xff]  ;;  %v274_v61 = vld [vmem:[#allocation2 + $0x44] sm:$0xff]  ;;  %v307_v0 = vmax.f32 %v283_v46, %v295_v41  ;;  %v285_v5 = vmax.f32 %v261_v54, %v273_v55  ;;  %v276_v13 = vld [vmem:[#allocation2 + $0x54] sm:$0xff] }
  0xb6   : > { %v284_v53 = vmax.f32 %v260_v45, %v272_v49  ;;  %v305_v58 = vmax.f32 %v281_v48, %v293_v44  ;;  %v296_v59 = vld [vmem:[#allocation2 + $0x2d] sm:$0xff]  ;;  %v298_v7 = vld [vmem:[#allocation2 + $0x45] sm:$0xff]  ;;  %v286_v10 = vmax.f32 %v262_v1, %v274_v61  ;;  %v300_v20 = vld [vmem:[#allocation2 + $0x55] sm:$0xff] }
  0xb7   : > { %v320_v63 = vld [vmem:[#allocation2 + $0x2e] sm:$0xff]  ;;  %356 = vrot.lane.b32.xlu0 %v1417_v57, %s1250_s26  ;;  %v319_v15 = vld [vmem:[#allocation2 + $0x26] sm:$0xff]  ;;  %v309_v23 = vmax.f32 %v285_v5, %v297_v6  ;;  %v321_v39 = vld [vmem:[#allocation2 + $0x36] sm:$0xff] }
  0xb8   : > { %v308_v62 = vmax.f32 %v284_v53, %v296_v59  ;;  %v239_v2 = vld [vmem:[#allocation2 + $0x4a] sm:$0xff]  ;;  %v1421_v4 = vmax.f32 %v305_v58, %v317_v52  ;;  %v240_v11 = vld [vmem:[#allocation2 + $0x52] sm:$0xff]  ;;  %v1427_v18 = vmax.f32 %v307_v0, %v319_v15  ;;  %v310_v19 = vmax.f32 %v286_v10, %v298_v7  ;;  %v241_v27 = vld [vmem:[#allocation2 + $0x62] sm:$0xff] }
  0xb9   : > { %v251_v3 = vld [vmem:[#allocation2 + $0x4b] sm:$0xff]  ;;  %v252_v12 = vld [vmem:[#allocation2 + $0x53] sm:$0xff]  ;;  %v253_v28 = vld [vmem:[#allocation2 + $0x63] sm:$0xff]  ;;  %v1435_v42 = vmax.f32 %v309_v23, %v321_v39 }
  0xba   : > { %v263_v8 = vmax.f32 %v239_v2, %v251_v3  ;;  %v275_v9 = vld [vmem:[#allocation2 + $0x4c] sm:$0xff]  ;;  %354 = vrot.lane.b32.xlu1 %v1421_v4, %s1250_s26  ;;  %v1425_v14 = vmax.f32 %v308_v62, %v320_v63  ;;  %v264_v16 = vmax.f32 %v240_v11, %v252_v12  ;;  %v265_v31 = vmax.f32 %v241_v27, %v253_v28  ;;  %v277_v32 = vld [vmem:[#allocation2 + $0x64] sm:$0xff]  ;;  %v324_v40 = vld [vmem:[#allocation2 + $0x56] sm:$0xff] }
  0xbb   : > { %v242_v17 = vld [vmem:[#allocation2 + $0x6a] sm:$0xff]  ;;  %v243_v37 = vld [vmem:[#allocation2 + $0x72] sm:$0xff] }
  0xbc   : > { %v254_v21 = vld [vmem:[#allocation2 + $0x6b] sm:$0xff]  ;;  %360 = vrot.lane.b32.xlu0 %v1425_v14, %s1250_s26  ;;  %v287_v24 = vmax.f32 %v263_v8, %v275_v9  ;;  %v288_v25 = vmax.f32 %v264_v16, %v276_v13  ;;  %v255_v38 = vld [vmem:[#allocation2 + $0x73] sm:$0xff]  ;;  %v289_v44 = vmax.f32 %v265_v31, %v277_v32 }
  0xbd   : > { %v278_v22 = vld [vmem:[#allocation2 + $0x6c] sm:$0xff]  ;;  %v266_v26 = vmax.f32 %v242_v17, %v254_v21  ;;  %v267_v45 = vmax.f32 %v243_v37, %v255_v38  ;;  %v279_v47 = vld [vmem:[#allocation2 + $0x74] sm:$0xff] }
  0xbe   : > { %v322_v29 = vld [vmem:[#allocation2 + $0x46] sm:$0xff]  ;;  %358 = vrot.lane.b32.xlu1 %v1427_v18, %s1250_s26  ;;  %v312_v34 = vmax.f32 %v288_v25, %v300_v20  ;;  %v323_v50 = vld [vmem:[#allocation2 + $0x4e] sm:$0xff]  ;;  %v327_v61 = vld [vmem:[#allocation2 + $0x76] sm:$0xff] }
  0xbf   : > { %v299_v30 = vld [vmem:[#allocation2 + $0x4d] sm:$0xff]  ;;  %v1433_v33 = vmax.f32 %v310_v19, %v322_v29  ;;  %v290_v36 = vmax.f32 %v266_v26, %v278_v22  ;;  %v301_v46 = vld [vmem:[#allocation2 + $0x65] sm:$0xff]  ;;  %v291_v54 = vmax.f32 %v267_v45, %v279_v47  ;;  %v303_v56 = vld [vmem:[#allocation2 + $0x75] sm:$0xff] }
  0xc0   : > { %v302_v41 = vld [vmem:[#allocation2 + $0x6d] sm:$0xff]  ;;  %v311_v43 = vmax.f32 %v287_v24, %v299_v30  ;;  %v1441_v48 = vmax.f32 %v312_v34, %v324_v40  ;;  %v313_v53 = vmax.f32 %v289_v44, %v301_v46 }
  0xc1   : > { %364 = vrot.lane.b32.xlu0 %v1433_v33, %s1250_s26  ;;  %v314_v49 = vmax.f32 %v290_v36, %v302_v41  ;;  %v326_v51 = vld [vmem:[#allocation2 + $0x6e] sm:$0xff]  ;;  %v325_v55 = vld [vmem:[#allocation2 + $0x66] sm:$0xff]  ;;  %v315_v60 = vmax.f32 %v291_v54, %v303_v56 }
  0xc2   : > { %362 = vrot.lane.b32.xlu1 %v1435_v42, %s1250_s26  ;;  %v1443_v52 = vmax.f32 %v311_v43, %v323_v50  ;;  %v1453_v59 = vmax.f32 %v313_v53, %v325_v55 }
  0xc3   : > { %v1449_v58 = vmax.f32 %v314_v49, %v326_v51  ;;  %v1459_v62 = vmax.f32 %v315_v60, %v327_v61 }
  0xc5   : > { %368 = vrot.lane.b32.xlu0 %v1441_v48, %s1250_s26 }
  0xc6   : > { %366 = vrot.lane.b32.xlu1 %v1443_v52, %s1250_s26 }
  0xc9   : > { %372 = vrot.lane.b32.xlu0 %v1449_v58, %s1250_s26 }
  0xca   : > { %370 = vrot.lane.b32.xlu1 %v1453_v59, %s1250_s26 }
  0xcd   : > { %400 = vrot.lane.b32.xlu0 %v1413_v35, %s1251_s27 }
  0xce   : > { %374 = vrot.lane.b32.xlu1 %v1459_v62, %s1250_s26 }
  0xd1   : > { %404 = vrot.lane.b32.xlu0 %v1417_v57, %s1251_s27 }
  0xd2   : > { %402 = vrot.lane.b32.xlu1 %v1421_v4, %s1251_s27 }
  0xd5   : > { %408 = vrot.lane.b32.xlu0 %v1425_v14, %s1251_s27 }
  0xd6   : > { %406 = vrot.lane.b32.xlu1 %v1427_v18, %s1251_s27 }
  0xd9   : > { %412 = vrot.lane.b32.xlu0 %v1433_v33, %s1251_s27 }
  0xda   : > { %410 = vrot.lane.b32.xlu1 %v1435_v42, %s1251_s27 }
  0xdd   : > { %416 = vrot.lane.b32.xlu0 %v1441_v48, %s1251_s27 }
  0xde   : > { %414 = vrot.lane.b32.xlu1 %v1443_v52, %s1251_s27 }
  0xe1   : > { %420 = vrot.lane.b32.xlu0 %v1449_v58, %s1251_s27 }
  0xe2   : > { %418 = vrot.lane.b32.xlu1 %v1453_v59, %s1251_s27 }
  0xe5   : > { %448 = vrot.lane.b32.xlu0 %v1413_v35, %s1252_s28 }
  0xe6   : > { %422 = vrot.lane.b32.xlu1 %v1459_v62, %s1251_s27 }
  0xe9   : > { %452 = vrot.lane.b32.xlu0 %v1417_v57, %s1252_s28 }
  0xea   : > { %450 = vrot.lane.b32.xlu1 %v1421_v4, %s1252_s28 }
  0xed   : > { %456 = vrot.lane.b32.xlu0 %v1425_v14, %s1252_s28 }
  0xee   : > { %454 = vrot.lane.b32.xlu1 %v1427_v18, %s1252_s28 }
  0xf1   : > { %460 = vrot.lane.b32.xlu0 %v1433_v33, %s1252_s28 }
  0xf2   : > { %458 = vrot.lane.b32.xlu1 %v1435_v42, %s1252_s28 }
  0xf5   : > { %464 = vrot.lane.b32.xlu0 %v1441_v48, %s1252_s28 }
  0xf6   : > { %462 = vrot.lane.b32.xlu1 %v1443_v52, %s1252_s28 }
  0xf9   : > { %468 = vrot.lane.b32.xlu0 %v1449_v58, %s1252_s28 }
  0xfa   : > { %466 = vrot.lane.b32.xlu1 %v1453_v59, %s1252_s28 }
  0xfd   : > { %496 = vrot.lane.b32.xlu0 %v1413_v35, %s1253_s29 }
  0xfe   : > { %470 = vrot.lane.b32.xlu1 %v1459_v62, %s1252_s28 }
 0x101   : > { %500 = vrot.lane.b32.xlu0 %v1417_v57, %s1253_s29 }
 0x102   : > { %498 = vrot.lane.b32.xlu1 %v1421_v4, %s1253_s29 }
 0x105   : > { %504 = vrot.lane.b32.xlu0 %v1425_v14, %s1253_s29 }
 0x106   : > { %502 = vrot.lane.b32.xlu1 %v1427_v18, %s1253_s29 }
 0x109   : > { %508 = vrot.lane.b32.xlu0 %v1433_v33, %s1253_s29 }
 0x10a   : > { %506 = vrot.lane.b32.xlu1 %v1435_v42, %s1253_s29 }
 0x10d   : > { %512 = vrot.lane.b32.xlu0 %v1441_v48, %s1253_s29 }
 0x10e   : > { %510 = vrot.lane.b32.xlu1 %v1443_v52, %s1253_s29 }
 0x111   : > { %516 = vrot.lane.b32.xlu0 %v1449_v58, %s1253_s29 }
 0x112   : > { %514 = vrot.lane.b32.xlu1 %v1453_v59, %s1253_s29 }
 0x116   : > { %518 = vrot.lane.b32.xlu1 %v1459_v62, %s1253_s29 }
 0x125   : > { %v353_v63 = vpop.permute.xlu0 %352 }
 0x126   : > { %v388_v37 = vmax.f32 %v1413_v35, %v353_v63 }
 0x129   : > { %v1521_v0 = vpop.permute.xlu0 %356 }
 0x12c   : > { %v355_v1 = vpop.permute.xlu1 %354 }
 0x12d   : > { %v389_v44 = vmax.f32 %v1421_v4, %v355_v1 }
 0x12e   : > { %v361_v2 = vpop.permute.xlu0 %360 }
 0x12f   : > { %v392_v47 = vmax.f32 %v1425_v14, %v361_v2 }
 0x130   : > { %v359_v3 = vpop.permute.xlu1 %358 }
 0x131   : > { %v391_v35 = vmax.f32 %v1427_v18, %v359_v3 }
 0x133   : > { %v365_v5 = vpop.permute.xlu0 %364 }
 0x134   : > { %v1523_v6 = vpop.permute.xlu1 %362  ;;  %v394_v55 = vmax.f32 %v1433_v33, %v365_v5 }
 0x137   : > { %v1525_v7 = vpop.permute.xlu0 %368 }
 0x138   : > { %v367_v8 = vpop.permute.xlu1 %366 }
 0x13b   : > { %v1527_v9 = vpop.permute.xlu0 %372 }
 0x13c   : > { %v1529_v10 = vpop.permute.xlu1 %370 }
 0x13f   : > { %v401_v11 = vpop.permute.xlu0 %400 }
 0x140   : > { %v1531_v12 = vpop.permute.xlu1 %374  ;;  %v436_v39 = vmax.f32 %v388_v37, %v401_v11 }
 0x143   : > { %v1533_v13 = vpop.permute.xlu0 %404 }
 0x144   : > { %v403_v15 = vpop.permute.xlu1 %402 }
 0x145   : > { %v437_v49 = vmax.f32 %v389_v44, %v403_v15  ;;  %v395_v15 = vmax.f32 %v1443_v52, %v367_v8 }
 0x147   : > { %v409_v16 = vpop.permute.xlu0 %408 }
 0x148   : > { %v407_v17 = vpop.permute.xlu1 %406  ;;  %v440_v51 = vmax.f32 %v392_v47, %v409_v16  ;;  %v398_v16 = vmax.f32 %v1449_v58, %v1527_v9  ;;  %v393_v58 = vmax.f32 %v1435_v42, %v1523_v6 }
 0x149   : > { %v439_v56 = vmax.f32 %v391_v35, %v407_v17 }
 0x14b   : > { %v413_v19 = vpop.permute.xlu0 %412 }
 0x14c   : > { %v1535_v20 = vpop.permute.xlu1 %410  ;;  %v442_v63 = vmax.f32 %v394_v55, %v413_v19 }
 0x14f   : > { %v1537_v21 = vpop.permute.xlu0 %416 }
 0x150   : > { %v415_v22 = vpop.permute.xlu1 %414 }
 0x151   : > { %v443_v17 = vmax.f32 %v395_v15, %v415_v22 }
 0x153   : > { %v421_v23 = vpop.permute.xlu0 %420 }
 0x154   : > { %v419_v24 = vpop.permute.xlu1 %418 }
 0x157   : > { %v449_v25 = vpop.permute.xlu0 %448 }
 0x158   : > { %v1539_v26 = vpop.permute.xlu1 %422  ;;  %v484_v41 = vmax.f32 %v436_v39, %v449_v25  ;;  %v397_v25 = vmax.f32 %v1453_v59, %v1529_v10  ;;  %v390_v39 = vmax.f32 %v1417_v57, %v1521_v0  ;;  %v399_v57 = vmax.f32 %v1459_v62, %v1531_v12 }
 0x15a   : > { %v445_v8 = vmax.f32 %v397_v25, %v419_v24  ;;  %v438_v22 = vmax.f32 %v390_v39, %v1533_v13  ;;  %v447_v13 = vmax.f32 %v399_v57, %v1539_v26 }
 0x15b   : > { %v1541_v27 = vpop.permute.xlu0 %452 }
 0x15c   : > { %v451_v28 = vpop.permute.xlu1 %450  ;;  %v486_v42 = vmax.f32 %v438_v22, %v1541_v27 }
 0x15d   : > { %v485_v53 = vmax.f32 %v437_v49, %v451_v28  ;;  %v446_v28 = vmax.f32 %v398_v16, %v421_v23  ;;  %v441_v23 = vmax.f32 %v393_v58, %v1535_v20 }
 0x15f   : > { %v457_v29 = vpop.permute.xlu0 %456 }
 0x160   : > { %v455_v30 = vpop.permute.xlu1 %454  ;;  %v488_v4 = vmax.f32 %v440_v51, %v457_v29 }
 0x161   : > { %v487_v1 = vmax.f32 %v439_v56, %v455_v30 }
 0x163   : > { %v461_v31 = vpop.permute.xlu0 %460 }
 0x164   : > { %v1543_v32 = vpop.permute.xlu1 %458  ;;  %v490_v11 = vmax.f32 %v442_v63, %v461_v31 }
 0x165   : > { %v489_v0 = vmax.f32 %v441_v23, %v1543_v32 }
 0x167   : > { %v1545_v34 = vpop.permute.xlu0 %464 }
 0x168   : > { %v463_v36 = vpop.permute.xlu1 %462 }
 0x169   : > { %v491_v29 = vmax.f32 %v443_v17, %v463_v36  ;;  %v396_v36 = vmax.f32 %v1441_v48, %v1525_v7 }
 0x16b   : > { %v469_v38 = vpop.permute.xlu0 %468  ;;  %v444_v6 = vmax.f32 %v396_v36, %v1537_v21 }
 0x16c   : > { %v467_v40 = vpop.permute.xlu1 %466  ;;  %v494_v30 = vmax.f32 %v446_v28, %v469_v38 }
 0x16d   : > { %v493_v9 = vmax.f32 %v445_v8, %v467_v40  ;;  %v492_v62 = vmax.f32 %v444_v6, %v1545_v34 }
 0x16f   : > { %v497_v43 = vpop.permute.xlu0 %496 }
 0x170   : > { %v1549_v45 = vmax.f32 %v484_v41, %v497_v43  ;;  %v1551_v46 = vpop.permute.xlu1 %470 }
 0x171   : > { %v495_v12 = vmax.f32 %v447_v13, %v1551_v46 }
 0x172   : > { %552 = vrot.lane.b32.xlu0 %v1549_v45, %s1253_s29  ;;  %v621_v41 = vrot.slane %v1549_v45, 4 }
 0x173   : > { %v501_v50 = vpop.permute.xlu0 %500 }
 0x174   : > { %v499_v54 = vpop.permute.xlu1 %498  ;;  %v1605_v20 = vmax.f32 %v486_v42, %v501_v50 }
 0x175   : > { %v1558_v60 = vmax.f32 %v485_v53, %v499_v54 }
 0x176   : > { %v1628_v26 = vrot.slane %v1605_v20, 4 }
 0x177   : > { %v505_v61 = vpop.permute.xlu0 %504  ;;  %554 = vrot.lane.b32.xlu1 %v1558_v60, %s1253_s29  ;;  %v622_v40 = vrot.slane %v1558_v60, 4 }
 0x178   : > { %v1562_v14 = vmax.f32 %v488_v4, %v505_v61  ;;  %v503_v2 = vpop.permute.xlu1 %502 }
 0x179   : > { %v1564_v18 = vmax.f32 %v487_v1, %v503_v2  ;;  %v1650_v43 = vsel %vm620_vm5, %v621_v41, %v622_v40  ;;  %v1654_v44 = vsel %vm620_vm5, %v622_v40, %v1628_v26 }
 0x17a   : > { %v627_v47 = vrot.slane %v1562_v14, 4 }
 0x17b   : > { %v509_v3 = vpop.permute.xlu0 %508  ;;  %556 = vrot.lane.b32.xlu0 %v1564_v18, %s1253_s29  ;;  %558 = vrot.lane.b32.xlu1 %v1562_v14, %s1253_s29  ;;  %v626_v46 = vrot.slane %v1564_v18, 4 }
 0x17c   : > { %v1571_v33 = vmax.f32 %v490_v11, %v509_v3  ;;  %v507_v5 = vpop.permute.xlu1 %506 }
 0x17d   : > { %v1607_v48 = vmax.f32 %v489_v0, %v507_v5  ;;  %v1663_v49 = vsel %vm620_vm5, %v626_v46, %v627_v47 }
 0x17e   : > { %v631_v51 = vrot.slane %v1571_v33, 4 }
 0x17f   : > { %v513_v19 = vpop.permute.xlu0 %512  ;;  %560 = vrot.lane.b32.xlu0 %v1571_v33, %s1253_s29  ;;  %v1631_v32 = vrot.slane %v1607_v48, 4 }
 0x180   : > { %v511_v52 = vpop.permute.xlu1 %510  ;;  %v1615_v27 = vmax.f32 %v492_v62, %v513_v19 }
 0x181   : > { %v1579_v31 = vmax.f32 %v491_v29, %v511_v52  ;;  %v1667_v50 = vsel %vm620_vm5, %v627_v47, %v1631_v32 }
 0x182   : > { %v1638_v34 = vrot.slane %v1615_v27, 4 }
 0x183   : > { %v517_v37 = vpop.permute.xlu0 %516  ;;  %562 = vrot.lane.b32.xlu1 %v1579_v31, %s1253_s29  ;;  %v632_v35 = vrot.slane %v1579_v31, 4 }
 0x184   : > { %v1587_v59 = vmax.f32 %v494_v30, %v517_v37  ;;  %v515_v10 = vpop.permute.xlu1 %514 }
 0x185   : > { %v1591_v24 = vmax.f32 %v493_v9, %v515_v10  ;;  %v1676_v53 = vsel %vm620_vm5, %v631_v51, %v632_v35  ;;  %v1680_v54 = vsel %vm620_vm5, %v632_v35, %v1638_v34 }
 0x186   : > { %v637_v55 = vrot.slane %v1587_v59, 4 }
 0x187   : > { %564 = vrot.lane.b32.xlu0 %v1591_v24, %s1253_s29  ;;  %566 = vrot.lane.b32.xlu1 %v1587_v59, %s1253_s29  ;;  %v636_v56 = vrot.slane %v1591_v24, 4 }
 0x188   : > { %v519_v7 = vpop.permute.xlu1 %518 }
 0x189   : > { %v1617_v21 = vmax.f32 %v495_v12, %v519_v7  ;;  %v1693_v61 = vsel %vm620_vm5, %v636_v56, %v637_v55 }
 0x18b   : > { %729 = vrot.lane.b32.xlu0 %v1605_v20, %s1253_s29  ;;  %731 = vrot.lane.b32.xlu1 %v1607_v48, %s1253_s29  ;;  %v1641_v38 = vrot.slane %v1617_v21, 4 }
 0x18d   : > { %v1690_v4 = vsel %vm620_vm5, %v637_v55, %v1641_v38 }
 0x18f   : > { %733 = vrot.lane.b32.xlu0 %v1615_v27, %s1253_s29  ;;  %735 = vrot.lane.b32.xlu1 %v1617_v21, %s1253_s29 }
 0x193   : > { %584 = vrot.lane.b32.xlu0 %v1549_v45, %s1254_s30  ;;  %586 = vrot.lane.b32.xlu1 %v1558_v60, %s1254_s30 }
 0x197   : > { %798 = vrot.lane.b32.xlu0 %v1628_v26, %s1253_s29  ;;  %800 = vrot.lane.b32.xlu1 %v1631_v32, %s1253_s29 }
 0x19b   : > { %802 = vrot.lane.b32.xlu0 %v1638_v34, %s1253_s29  ;;  %804 = vrot.lane.b32.xlu1 %v1641_v38, %s1253_s29 }
 0x19f   : > { %657 = vrot.lane.b32.xlu0 %v1650_v43, %s1253_s29  ;;  %659 = vrot.lane.b32.xlu1 %v1654_v44, %s1253_s29 }
 0x1a3   : > { %661 = vrot.lane.b32.xlu0 %v1663_v49, %s1253_s29  ;;  %663 = vrot.lane.b32.xlu1 %v1667_v50, %s1253_s29 }
 0x1a7   : > { %665 = vrot.lane.b32.xlu0 %v1676_v53, %s1253_s29  ;;  %667 = vrot.lane.b32.xlu1 %v1680_v54, %s1253_s29 }
 0x1ab   : > { %671 = vrot.lane.b32.xlu1 %v1690_v4, %s1253_s29  ;;  %669 = vrot.lane.b32.xlu0 %v1693_v61, %s1253_s29 }
 0x1af   : > { %590 = vrot.lane.b32.xlu1 %v1562_v14, %s1254_s30  ;;  %588 = vrot.lane.b32.xlu0 %v1564_v18, %s1254_s30 }
 0x1b3   : > { %594 = vrot.lane.b32.xlu1 %v1579_v31, %s1254_s30  ;;  %592 = vrot.lane.b32.xlu0 %v1571_v33, %s1254_s30 }
 0x1b7   : > { %598 = vrot.lane.b32.xlu1 %v1587_v59, %s1254_s30  ;;  %596 = vrot.lane.b32.xlu0 %v1591_v24, %s1254_s30 }
 0x1bb   : > { %751 = vrot.lane.b32.xlu1 %v1607_v48, %s1254_s30  ;;  %749 = vrot.lane.b32.xlu0 %v1605_v20, %s1254_s30 }
 0x1bf   : > { %755 = vrot.lane.b32.xlu1 %v1617_v21, %s1254_s30  ;;  %753 = vrot.lane.b32.xlu0 %v1615_v27, %s1254_s30 }
 0x1c3   : > { %691 = vrot.lane.b32.xlu1 %v1654_v44, %s1254_s30  ;;  %689 = vrot.lane.b32.xlu0 %v1650_v43, %s1254_s30 }
 0x1c7   : > { %695 = vrot.lane.b32.xlu1 %v1667_v50, %s1254_s30  ;;  %693 = vrot.lane.b32.xlu0 %v1663_v49, %s1254_s30 }
 0x1cb   : > { %699 = vrot.lane.b32.xlu1 %v1680_v54, %s1254_s30  ;;  %697 = vrot.lane.b32.xlu0 %v1676_v53, %s1254_s30 }
 0x1cf   : > { %703 = vrot.lane.b32.xlu1 %v1690_v4, %s1254_s30  ;;  %701 = vrot.lane.b32.xlu0 %v1693_v61, %s1254_s30 }
 0x1e4   : > { %v553_v63 = vpop.permute.xlu0 %552 }
 0x1e5   : > { %1035 = vst.msk [vmem:[%s1382_s25 + $0x7c] sm:$0xf0] %vm886_vm6, %v553_v63  ;;  %v1784_v37 = vmax.f32 %v1549_v45, %v553_v63 }
 0x1e7   : > { %v786_v36 = vmax.f32 %v1784_v37, %v1650_v43 }
 0x1e9   : > { %v1737_v1 = vpop.permute.xlu1 %554 }
 0x1ea   : > { %1036 = vst.msk [vmem:[%s1382_s25 + $0x84] sm:$0xff] %vm769_vm3, %v1737_v1  ;;  %v1788_v39 = vmax.f32 %v1558_v60, %v1737_v1 }
 0x1ec   : > { %v787_v23 = vmax.f32 %v1788_v39, %v1654_v44 }
 0x1ed   : > { %v1742_v2 = vpop.permute.xlu1 %558  ;;  %v557_v11 = vpop.permute.xlu0 %556 }
 0x1ee   : > { %1039 = vst.msk [vmem:[%s1382_s25 + $0x94] sm:$0xff] %vm769_vm3, %v1742_v2  ;;  %v1791_v10 = vmax.f32 %v1564_v18, %v557_v11  ;;  %v1807_v18 = vmax.f32 %v1562_v14, %v1742_v2 }
 0x1ef   : > { %1038 = vst.msk [vmem:[%s1382_s25 + $0x8c] sm:$0xf0] %vm886_vm6, %v557_v11 }
 0x1f0   : > { %v789_v7 = vmax.f32 %v1791_v10, %v1663_v49  ;;  %v790_v35 = vmax.f32 %v1807_v18, %v1667_v50 }
 0x1f1   : > { %v561_v3 = vpop.permute.xlu0 %560 }
 0x1f2   : > { %1041 = vst.msk [vmem:[%s1382_s25 + $0x9c] sm:$0xf0] %vm886_vm6, %v561_v3  ;;  %v1822_v46 = vmax.f32 %v1571_v33, %v561_v3 }
 0x1f4   : > { %v792_v63 = vmax.f32 %v1822_v46, %v1676_v53 }
 0x1f5   : > { %v1751_v15 = vpop.permute.xlu1 %562 }
 0x1f6   : > { %1042 = vst.msk [vmem:[%s1382_s25 + $0xa4] sm:$0xff] %vm769_vm3, %v1751_v15 }
 0x1f9   : > { %v1756_v5 = vpop.permute.xlu1 %566  ;;  %v565_v16 = vpop.permute.xlu0 %564 }
 0x1fa   : > { %1045 = vst.msk [vmem:[%s1382_s25 + $0xb4] sm:$0xff] %vm769_vm3, %v1756_v5  ;;  %v1839_v11 = vmax.f32 %v1591_v24, %v565_v16  ;;  %v583_v24 = vmax.f32 %v1587_v59, %v1756_v5 }
 0x1fb   : > { %1044 = vst.msk [vmem:[%s1382_s25 + $0xac] sm:$0xf0] %vm886_vm6, %v565_v16 }
 0x1fd   : > { %v1763_v17 = vpop.permute.xlu1 %731  ;;  %v1765_v19 = vpop.permute.xlu0 %729 }
 0x1fe   : > { %1040 = vst.msk [vmem:[%s1382_s25 + $0x9c] sm:$0xf] %vm889_vm7, %v1763_v17  ;;  %1037 = vst.msk [vmem:[%s1382_s25 + $0x8c] sm:$0xf] %vm889_vm7, %v1765_v19  ;;  %v778_v22 = vmax.f32 %v1605_v20, %v1765_v19  ;;  %v779_v6 = vmax.f32 %v1607_v48, %v1763_v17 }
 0x200   : > { %v788_v13 = vmax.f32 %v778_v22, %v1628_v26  ;;  %v581_v26 = vmax.f32 %v1579_v31, %v1751_v15  ;;  %v791_v47 = vmax.f32 %v779_v6, %v1631_v32 }
 0x201   : > { %v1771_v25 = vpop.permute.xlu1 %735  ;;  %v1773_v28 = vpop.permute.xlu0 %733 }
 0x202   : > { %1046 = vst.msk [vmem:[%s1382_s25 + $0xbc] sm:$0xf] %vm889_vm7, %v1771_v25  ;;  %1043 = vst.msk [vmem:[%s1382_s25 + $0xac] sm:$0xf] %vm889_vm7, %v1773_v28  ;;  %v780_v32 = vmax.f32 %v1615_v27, %v1773_v28  ;;  %v793_v3 = vmax.f32 %v581_v26, %v1680_v54  ;;  %v781_v16 = vmax.f32 %v1617_v21, %v1771_v25 }
 0x205   : > { %v1779_v29 = vpop.permute.xlu1 %586  ;;  %v1781_v52 = vpop.permute.xlu0 %584 }
 0x209   : > { %v801_v8 = vpop.permute.xlu1 %800  ;;  %v799_v30 = vpop.permute.xlu0 %798 }
 0x20a   : > { %v812_v40 = vmax.f32 %v788_v13, %v799_v30  ;;  %v815_v56 = vmax.f32 %v791_v47, %v801_v8 }
 0x20d   : > { %v805_v58 = vpop.permute.xlu1 %804  ;;  %v803_v9 = vpop.permute.xlu0 %802 }
 0x211   : > { %v1799_v45 = vpop.permute.xlu1 %659  ;;  %v1801_v57 = vpop.permute.xlu0 %657 }
 0x212   : > { %v811_v42 = vmax.f32 %v787_v23, %v1799_v45  ;;  %v810_v0 = vmax.f32 %v786_v36, %v1801_v57  ;;  %v794_v36 = vmax.f32 %v780_v32, %v1638_v34  ;;  %v609_v32 = vmax.f32 %v1788_v39, %v1779_v29 }
 0x214   : > { %836 = vrot.lane.b32.xlu1 %v811_v42, %s1251_s27  ;;  %834 = vrot.lane.b32.xlu0 %v810_v0, %s1251_s27  ;;  %v795_v42 = vmax.f32 %v1839_v11, %v1693_v61  ;;  %v818_v13 = vmax.f32 %v794_v36, %v803_v9 }
 0x215   : > { %v1816_v62 = vpop.permute.xlu1 %663  ;;  %v1818_v12 = vpop.permute.xlu0 %661 }
 0x216   : > { %v813_v41 = vmax.f32 %v789_v7, %v1818_v12  ;;  %v814_v33 = vmax.f32 %v790_v35, %v1816_v62 }
 0x218   : > { %838 = vrot.lane.b32.xlu0 %v812_v40, %s1251_s27  ;;  %840 = vrot.lane.b32.xlu1 %v813_v41, %s1251_s27  ;;  %v797_v40 = vmax.f32 %v781_v16, %v1641_v38  ;;  %v796_v41 = vmax.f32 %v583_v24, %v1690_v4 }
 0x219   : > { %v1831_v51 = vpop.permute.xlu1 %667  ;;  %v1833_v55 = vpop.permute.xlu0 %665 }
 0x21a   : > { %v817_v22 = vmax.f32 %v793_v3, %v1831_v51  ;;  %v816_v23 = vmax.f32 %v792_v63, %v1833_v55  ;;  %v821_v35 = vmax.f32 %v797_v40, %v805_v58  ;;  %v608_v3 = vmax.f32 %v1784_v37, %v1781_v52 }
 0x21c   : > { %842 = vrot.lane.b32.xlu0 %v814_v33, %s1251_s27  ;;  %844 = vrot.lane.b32.xlu1 %v815_v56, %s1251_s27  ;;  %v649_v36 = vmax.f32 %v608_v3, %v1650_v43 }
 0x21d   : > { %v1846_v30 = vpop.permute.xlu1 %671  ;;  %v1848_v8 = vpop.permute.xlu0 %669 }
 0x21e   : > { %v819_v7 = vmax.f32 %v795_v42, %v1848_v8  ;;  %v820_v56 = vmax.f32 %v796_v41, %v1846_v30  ;;  %v650_v42 = vmax.f32 %v609_v32, %v1654_v44  ;;  %v681_v52 = vmax.f32 %v649_v36, %v1801_v57 }
 0x220   : > { %848 = vrot.lane.b32.xlu1 %v817_v22, %s1251_s27  ;;  %846 = vrot.lane.b32.xlu0 %v816_v23, %s1251_s27  ;;  %v682_v39 = vmax.f32 %v650_v42, %v1799_v45 }
 0x221   : > { %v1861_v0 = vpop.permute.xlu1 %590  ;;  %v589_v6 = vpop.permute.xlu0 %588 }
 0x222   : > { %v611_v58 = vmax.f32 %v1807_v18, %v1861_v0  ;;  %v610_v22 = vmax.f32 %v1791_v10, %v589_v6 }
 0x224   : > { %850 = vrot.lane.b32.xlu0 %v818_v13, %s1251_s27  ;;  %852 = vrot.lane.b32.xlu1 %v819_v7, %s1251_s27  ;;  %v652_v37 = vmax.f32 %v611_v58, %v1667_v50  ;;  %v651_v18 = vmax.f32 %v610_v22, %v1663_v49 }
 0x225   : > { %v1868_v34 = vpop.permute.xlu1 %594  ;;  %v593_v47 = vpop.permute.xlu0 %592 }
 0x226   : > { %v613_v13 = vmax.f32 %v581_v26, %v1868_v34  ;;  %v612_v7 = vmax.f32 %v1822_v46, %v593_v47  ;;  %v684_v50 = vmax.f32 %v652_v37, %v1816_v62  ;;  %v683_v49 = vmax.f32 %v651_v18, %v1818_v12 }
 0x228   : > { %854 = vrot.lane.b32.xlu0 %v820_v56, %s1251_s27  ;;  %856 = vrot.lane.b32.xlu1 %v821_v35, %s1251_s27  ;;  %v654_v43 = vmax.f32 %v613_v13, %v1680_v54  ;;  %v653_v44 = vmax.f32 %v612_v7, %v1676_v53 }
 0x229   : > { %v1873_v9 = vpop.permute.xlu1 %598  ;;  %v597_v33 = vpop.permute.xlu0 %596 }
 0x22a   : > { %v615_v26 = vmax.f32 %v583_v24, %v1873_v9  ;;  %v614_v46 = vmax.f32 %v1839_v11, %v597_v33  ;;  %v685_v62 = vmax.f32 %v653_v44, %v1833_v55 }
 0x22c   : > { %v656_v11 = vmax.f32 %v615_v26, %v1690_v4 }
 0x22d   : > { %v752_v38 = vpop.permute.xlu1 %751  ;;  %v750_v63 = vpop.permute.xlu0 %749 }
 0x231   : > { %v1882_v23 = vpop.permute.xlu1 %755  ;;  %v754_v16 = vpop.permute.xlu0 %753 }
 0x235   : > { %v692_v10 = vpop.permute.xlu1 %691  ;;  %v690_v6 = vpop.permute.xlu0 %689 }
 0x236   : > { %v714_v40 = vmax.f32 %v682_v39, %v692_v10  ;;  %v713_v41 = vmax.f32 %v681_v52, %v690_v6 }
 0x238   : > { %v722_v45 = vmax.f32 %v714_v40, %v1605_v20  ;;  %v721_v57 = vmax.f32 %v713_v41, %v1558_v60  ;;  %v655_v20 = vmax.f32 %v614_v46, %v1693_v61  ;;  %v686_v60 = vmax.f32 %v654_v43, %v1831_v51 }
 0x239   : > { %v696_v47 = vpop.permute.xlu1 %695  ;;  %v694_v35 = vpop.permute.xlu0 %693 }
 0x23a   : > { %v742_v54 = vmax.f32 %v722_v45, %v1765_v19  ;;  %v741_v53 = vmax.f32 %v721_v57, %v1737_v1  ;;  %v716_v56 = vmax.f32 %v684_v50, %v696_v47  ;;  %v715_v24 = vmax.f32 %v683_v49, %v694_v35 }
 0x23c   : > { %v762_v33 = vmax.f32 %v742_v54, %v750_v63  ;;  %v761_v12 = vmax.f32 %v741_v53, %v1779_v29  ;;  %v724_v32 = vmax.f32 %v716_v56, %v1607_v48  ;;  %v723_v3 = vmax.f32 %v715_v24, %v1562_v14 }
 0x23d   : > { %v700_v19 = vpop.permute.xlu1 %699  ;;  %v698_v1 = vpop.permute.xlu0 %697  ;;  %v688_v29 = vmax.f32 %v656_v11, %v1846_v30  ;;  %v687_v48 = vmax.f32 %v655_v20, %v1848_v8 }
 0x23e   : > { %771 = vst.msk [vmem:[%s1382_s25 + $0x8] sm:$0xff] %vm769_vm3, %v762_v33  ;;  %770 = vst.msk [vmem:[%s1382_s25] sm:$0xff] %vm769_vm3, %v761_v12  ;;  %v744_v4 = vmax.f32 %v724_v32, %v1763_v17  ;;  %v743_v61 = vmax.f32 %v723_v3, %v1742_v2  ;;  %v718_v51 = vmax.f32 %v686_v60, %v700_v19 }
 0x23f   : > { %v717_v55 = vmax.f32 %v685_v62, %v698_v1 }
 0x240   : > { %v764_v63 = vmax.f32 %v744_v4, %v752_v38  ;;  %v763_v14 = vmax.f32 %v743_v61, %v1861_v0  ;;  %v726_v58 = vmax.f32 %v718_v51, %v1615_v27 }
 0x241   : > { %v725_v22 = vmax.f32 %v717_v55, %v1579_v31  ;;  %v704_v36 = vpop.permute.xlu1 %703  ;;  %v702_v42 = vpop.permute.xlu0 %701 }
 0x242   : > { %773 = vst.msk [vmem:[%s1382_s25 + $0x18] sm:$0xff] %vm769_vm3, %v764_v63  ;;  %772 = vst.msk [vmem:[%s1382_s25 + $0x10] sm:$0xff] %vm769_vm3, %v763_v14  ;;  %v746_v2 = vmax.f32 %v726_v58, %v1773_v28  ;;  %v720_v30 = vmax.f32 %v688_v29, %v704_v36  ;;  %v719_v8 = vmax.f32 %v687_v48, %v702_v42 }
 0x243   : > { %v745_v17 = vmax.f32 %v725_v22, %v1751_v15 }
 0x244   : > { %v766_v0 = vmax.f32 %v746_v2, %v754_v16  ;;  %v728_v31 = vmax.f32 %v720_v30, %v1617_v21  ;;  %v727_v38 = vmax.f32 %v719_v8, %v1587_v59 }
 0x245   : > { %v765_v27 = vmax.f32 %v745_v17, %v1868_v34 }
 0x246   : > { %775 = vst.msk [vmem:[%s1382_s25 + $0x28] sm:$0xff] %vm769_vm3, %v766_v0  ;;  %v748_v28 = vmax.f32 %v728_v31, %v1771_v25  ;;  %v747_v15 = vmax.f32 %v727_v38, %v1756_v5 }
 0x247   : > { %774 = vst.msk [vmem:[%s1382_s25 + $0x20] sm:$0xff] %vm769_vm3, %v765_v27 }
 0x248   : > { %v768_v13 = vmax.f32 %v748_v28, %v1882_v23  ;;  %v767_v16 = vmax.f32 %v747_v15, %v1873_v9 }
 0x24a   : > { %777 = vst.msk [vmem:[%s1382_s25 + $0x38] sm:$0xff] %vm769_vm3, %v768_v13  ;;  %776 = vst.msk [vmem:[%s1382_s25 + $0x30] sm:$0xff] %vm769_vm3, %v767_v16 }
 0x286   : > { %v837_v59 = vpop.permute.xlu1 %836  ;;  %v835_v21 = vpop.permute.xlu0 %834 }
 0x287   : > { %1024 = vst.msk [vmem:[%s1382_s25 + $0x46] sm:$0xff] %vm769_vm3, %v837_v59 }
 0x288   : > { %1023 = vst.msk [vmem:[%s1382_s25 + $0x3e] sm:$0xfc] %vm871_vm8, %v835_v21 }
 0x28a   : > { %v841_v5 = vpop.permute.xlu1 %840  ;;  %v839_v25 = vpop.permute.xlu0 %838 }
 0x28b   : > { %1026 = vst.msk [vmem:[%s1382_s25 + $0x4e] sm:$0xfc] %vm871_vm8, %v841_v5 }
 0x28c   : > { %1025 = vst.msk [vmem:[%s1382_s25 + $0x4e] sm:$0x3] %vm874_vm9, %v839_v25 }
 0x28e   : > { %v845_v34 = vpop.permute.xlu1 %844  ;;  %v843_v9 = vpop.permute.xlu0 %842 }
 0x28f   : > { %1028 = vst.msk [vmem:[%s1382_s25 + $0x5e] sm:$0x3] %vm874_vm9, %v845_v34 }
 0x290   : > { %1027 = vst.msk [vmem:[%s1382_s25 + $0x56] sm:$0xff] %vm769_vm3, %v843_v9 }
 0x292   : > { %v849_v23 = vpop.permute.xlu1 %848  ;;  %v847_v7 = vpop.permute.xlu0 %846 }
 0x293   : > { %1030 = vst.msk [vmem:[%s1382_s25 + $0x66] sm:$0xff] %vm769_vm3, %v849_v23 }
 0x294   : > { %1029 = vst.msk [vmem:[%s1382_s25 + $0x5e] sm:$0xfc] %vm871_vm8, %v847_v7 }
 0x296   : > { %v853_v39 = vpop.permute.xlu1 %852  ;;  %v851_v52 = vpop.permute.xlu0 %850 }
 0x297   : > { %1032 = vst.msk [vmem:[%s1382_s25 + $0x6e] sm:$0xfc] %vm871_vm8, %v853_v39 }
 0x298   : > { %1031 = vst.msk [vmem:[%s1382_s25 + $0x6e] sm:$0x3] %vm874_vm9, %v851_v52 }
 0x29a   : > { %v857_v37 = vpop.permute.xlu1 %856  ;;  %v855_v18 = vpop.permute.xlu0 %854 }
 0x29b   : > { %1034 = vst.msk [vmem:[%s1382_s25 + $0x7e] sm:$0x3] %vm874_vm9, %v857_v37 }
 0x29c   : > { %1033 = vst.msk [vmem:[%s1382_s25 + $0x76] sm:$0xff] %vm769_vm3, %v855_v18 }
 0x29d   : > { %1176 = shalt.err (!%p1173_p6)
}
 0x29e   : > { %s1177_s23 = scalar_lea.hbm %s1966_s12, 4096  ;;  %s1181_s25 = scalar_lea.hbm %s2021_s1, 8192 }
 0x29f   : > { %p1178_p7 = scmp.ne.s32.totalorder %s1966_s12, %s1177_s23  ;;  %p1182_p13 = scmp.lt.s32.totalorder %s1966_s12, %s2021_s1 }
 0x2a0   : > { %p1183_p2 = scmp.lt.s32.totalorder %s1181_s25, %s1177_s23 }
 0x2a1   : > { %p1179_p10 = pnand %p1178_p7, %p1319_p9 }
 0x2a2   : > { %p1184_p8 = por %p1183_p2, %p1182_p13 }
 0x2a3   : > { %p1180_p4 = pneg %p1179_p10 }
 0x2a5   : > { %p1185_p12 = pnand %p1184_p8, %p1180_p4 }
 0x2a7   : > { %1188 = shalt.err (!%p1185_p12)
}
 0x2a8   : > { %s1256_s28 = smov 128   ;;  %s1257_s29 = smov 8  }
 0x2a9   : > { %1064 = dma.vmem_to_hbm [thread:$0]  (%p1319_p9), %s1968_s3, 4096, %s1966_s12, %s910_s9, %s1256_s28, %s1256_s28, %s1257_s29  }
 0x2aa PF: > { %s941_s30 = sand.u32 1, %s1223_s6   ;;  %p2027_p0 = scmp.ge.s32.totalorder %s1243_s11, 2 }
 0x2ab   : > { %s942_s2 = scalar_lea.sflag [#allocation5], %s941_s30 }
 0x2ac   : > { %p1071_p1 = pnand %p2027_p0, %p1326_p11 }
 0x2ae   : > { %p1072_p3 = pneg %p1071_p1 }
 0x2b0   : > { %1218 = dma.done.wait (%p1072_p3), %s942_s2, 4096  }
 0x2b1   : > { %1220 = vsyncadd (%p1072_p3), %s942_s2, 4294963200  ;;  %s17_s11 = sadd.s32 1, %s1243_s11   ;;  %s2028_s6 = smov %s1227_s7 }
 0x2b2   : > { %p14_p5 = scmp.ge.s32.totalorder %s17_s11, 4   ;;  %s2029_s7 = smov %s1231_s8 }
 0x2b3   : > { %s2030_s8 = smov %s1324_s20  ;;  %s2031_s9 = smov %s1239_s10 }
 0x2b4   : > { %s2032_s10 = smov %s2034_s14  ;;  %16 = sbr.rel (!%p14_p5) target bundleno = 6 (0x6), region = 72 }
 0x2b9   :  { %947 = vsyncpa [#allocation4], 1 }
 0x2ba   :  { %949 = vsyncpa [#allocation4 + $0x1], 1 }
 0x2bb   :  { %950 = vsyncpa [#allocation5], 1 }
 0x2bc   :  { %952 = vsyncpa [#allocation5 + $0x1], 1 }

</bundles_post_ra>
